<compile_context>
chip_gen: v7x
topology: tpu7x:2x2x1
jax: 0.10.0
libtpu: 0.0.40
codegen_flags: <defaults>
</compile_context>

<pallas_src>
import functools

import jax
import jax.numpy as jnp
from jax.experimental import pallas as pl
from jax.experimental.pallas import tpu as pltpu


def _sigmoid(x):
    # Numerically stable sigmoid: 0.5 * (tanh(x/2) + 1); tanh is EUP-native.
    return 0.5 * (jnp.tanh(0.5 * x) + 1.0)


def _se_kernel(x_ref, w1_ref, b1_ref, w2_ref, b2_ref, o_ref, *, inv_l):
    # x_ref : (TB, C, L)  TB batch elements, channels on sublanes, length on lanes
    # w1_ref: (C, H)      first Linear weight, input-major
    # b1_ref: (1, H)
    # w2_ref: (H, C)      second Linear weight, input-major
    # b2_ref: (1, C)
    #
    # Squeeze: f32 mean over the lane (length) axis for all TB batches at once.
    # (Fused reduction; the f32 upcast is not held live across the MLP.)
    y = jnp.sum(x_ref[...].astype(jnp.float32), axis=-1) * inv_l        # (TB, C)

    # Batched 2-layer gate MLP (f32 accumulation on the MXU).
    h = jnp.dot(y, w1_ref[...], preferred_element_type=jnp.float32) + b1_ref[...]
    h = h * _sigmoid(h)                                                  # SiLU, (TB, H)
    g = _sigmoid(
        jnp.dot(h, w2_ref[...], preferred_element_type=jnp.float32) + b2_ref[...]
    )                                                                    # (TB, C)

    # Excite: multiply in the input dtype, broadcasting the per-channel gate
    # across the lane (length) axis.  Re-reads the VMEM ref (no cached f32 x).
    o_ref[...] = x_ref[...] * g.astype(o_ref.dtype)[:, :, None]


def _choose_batch_tile(B, C, L, itemsize, budget_bytes=8 << 20):
    """Largest divisor of B whose tile fits the VMEM budget, keeping >=2 grid
    steps when B allows (so both v7x TensorCores get work)."""
    # Double-buffered input + output tiles plus one f32 temporary per element.
    bytes_per_batch = C * L * (4 * itemsize + 4)
    cap = max(1, budget_bytes // max(bytes_per_batch, 1))
    tb = 1
    for d in range(1, B + 1):
        if B % d == 0 and d <= cap:
            tb = d
    if B >= 2 and B // tb < 2:
        for d in range(tb, 0, -1):
            if B % d == 0 and B // d >= 2:
                tb = d
                break
    return tb


def se_layer(x, w1, b1, w2, b2):
    """Squeeze-and-Excite forward.

    x : (B, C, L)  -- PyTorch NCL layout (C == `oup` of the module)
    w1: (C, H), b1: (H,)   -- first Linear  (input-major, i.e. transposed
    w2: (H, C), b2: (C,)   -- second Linear    PyTorch weights)
    Returns (B, C, L), same dtype as x.
    """
    B, C, L = x.shape
    H = w1.shape[1]
    itemsize = jnp.dtype(x.dtype).itemsize

    # Keep output stores lane-dense: pad L to a multiple of 128 if needed.
    # Zero padding is exact for the mean because inv_l uses the true L.
    L_pad = ((L + 127) // 128) * 128
    x_in = x if L_pad == L else jnp.pad(x, ((0, 0), (0, 0), (0, L_pad - L)))

    # Host-side (one-time) layout prep: row-form weights / biases so the
    # kernel body is a pure batched matmul + elementwise.
    w1k = w1.astype(jnp.float32)                     # (C, H)
    w2k = w2.astype(jnp.float32)                     # (H, C)
    b1k = b1.reshape(1, H).astype(jnp.float32)
    b2k = b2.reshape(1, C).astype(jnp.float32)

    TB = _choose_batch_tile(B, C, L_pad, itemsize)
    grid = (B // TB,)

    kernel = functools.partial(_se_kernel, inv_l=1.0 / float(L))

    cost = pl.CostEstimate(
        flops=2 * B * C * L + 4 * B * C * H,
        transcendentals=B * (H + C),
        bytes_accessed=2 * B * C * L * itemsize + (2 * C * H + C + H) * 4,
    )

    out = pl.pallas_call(
        kernel,
        out_shape=jax.ShapeDtypeStruct((B, C, L_pad), x.dtype),
        grid=grid,
        in_specs=[
            pl.BlockSpec((TB, C, L_pad), lambda b: (b, 0, 0)),   # TB batch elements
            pl.BlockSpec((C, H), lambda b: (0, 0)),
            pl.BlockSpec((1, H), lambda b: (0, 0)),
            pl.BlockSpec((H, C), lambda b: (0, 0)),
            pl.BlockSpec((1, C), lambda b: (0, 0)),
        ],
        out_specs=pl.BlockSpec((TB, C, L_pad), lambda b: (b, 0, 0)),
        compiler_params=pltpu.CompilerParams(
            dimension_semantics=("parallel",),
            vmem_limit_bytes=32 * 1024 * 1024,   # covers v5e's 16 MiB scoped default
        ),
        cost_estimate=cost,
    )(x_in, w1k, b1k, w2k, b2k)

    if L_pad != L:
        out = out[:, :, :L]
    return out


if __name__ == "__main__":
    # SELayer(inp=32, oup=16, reduction=4): hidden = inp // reduction = 8,
    # input x has channels == oup.  L=128 keeps output stores lane-dense.
    B, C, L = 2, 16, 128
    inp, reduction = 32, 4
    H = inp // reduction

    key = jax.random.PRNGKey(0)
    kx, k1, kb1, k2, kb2 = jax.random.split(key, 5)
    x = jax.random.normal(kx, (B, C, L), dtype=jnp.float32)          # (batch, channels, length)
    w1 = (jax.random.normal(k1, (C, H)) / jnp.sqrt(float(C))).astype(jnp.float32)
    b1 = (0.05 * jax.random.normal(kb1, (H,))).astype(jnp.float32)
    w2 = (jax.random.normal(k2, (H, C)) / jnp.sqrt(float(H))).astype(jnp.float32)
    b2 = (0.05 * jax.random.normal(kb2, (C,))).astype(jnp.float32)

    out = se_layer(x, w1, b1, w2, b2)
    out = jax.block_until_ready(out)

    # Pure-JAX reference (PyTorch SELayer eval semantics).
    y = jnp.mean(x, axis=-1)                                   # (B, C)
    h = y @ w1 + b1
    h = h * (0.5 * (jnp.tanh(0.5 * h) + 1.0))                  # SiLU
    g = 0.5 * (jnp.tanh(0.5 * (h @ w2 + b2)) + 1.0)            # Sigmoid
    ref = x * g[:, :, None]

    assert out.shape == (B, C, L), out.shape
    assert bool(jnp.all(jnp.isfinite(out)))
    assert bool(jnp.allclose(out, ref, atol=1e-5, rtol=1e-5)), \
        float(jnp.max(jnp.abs(out - ref)))
    print("KERNEL_OK")
</pallas_src>

<mosaic_0001>
module attributes {stable_mosaic.version = 11 : i64} {
  func.func @_se_kernel(%arg0: i32, %arg1: memref<1x16x128xf32, #tpu.memory_space<vmem>>, %arg2: memref<16x8xf32, #tpu.memory_space<vmem>>, %arg3: memref<1x8xf32, #tpu.memory_space<vmem>>, %arg4: memref<8x16xf32, #tpu.memory_space<vmem>>, %arg5: memref<1x16xf32, #tpu.memory_space<vmem>>, %arg6: memref<1x16x128xf32, #tpu.memory_space<vmem>>) attributes {dimension_semantics = [#tpu.dimension_semantics<parallel>], iteration_bounds = array<i64: 2>, scalar_prefetch = 0 : i64, scratch_operands = 0 : i64, tpu.core_type = #tpu.core_type<tc>, window_params = [{transform_indices = @transform_0, window_bounds = array<i64: 1, 16, 128>}, {pipeline_mode = #tpu.pipeline_mode<synchronous>, transform_indices = @transform_1, window_bounds = array<i64: 16, 8>}, {pipeline_mode = #tpu.pipeline_mode<synchronous>, transform_indices = @transform_2, window_bounds = array<i64: 1, 8>}, {pipeline_mode = #tpu.pipeline_mode<synchronous>, transform_indices = @transform_3, window_bounds = array<i64: 8, 16>}, {pipeline_mode = #tpu.pipeline_mode<synchronous>, transform_indices = @transform_4, window_bounds = array<i64: 1, 16>}, {transform_indices = @transform_5, window_bounds = array<i64: 1, 16, 128>}]} {
    %c0 = arith.constant 0 : index
    %c0_0 = arith.constant 0 : index
    %c0_1 = arith.constant 0 : index
    %0 = vector.load %arg1[%c0, %c0_0, %c0_1] : memref<1x16x128xf32, #tpu.memory_space<vmem>>, vector<1x16x128xf32>
    %cst = arith.constant dense<0.000000e+00> : vector<1x16xf32>
    %1 = vector.multi_reduction <add>, %0, %cst [2] : vector<1x16x128xf32> to vector<1x16xf32>
    %cst_2 = arith.constant 7.812500e-03 : f32
    %2 = vector.broadcast %cst_2 : f32 to vector<1x16xf32>
    %3 = arith.mulf %1, %2 : vector<1x16xf32>
    %c0_3 = arith.constant 0 : index
    %c0_4 = arith.constant 0 : index
    %4 = vector.load %arg2[%c0_3, %c0_4] : memref<16x8xf32, #tpu.memory_space<vmem>>, vector<16x8xf32>
    %cst_5 = arith.constant dense<0.000000e+00> : vector<1x8xf32>
    %5 = tpu.matmul %3, %4, %cst_5 {dimension_numbers = #tpu.dot_dimension_numbers<[1], [0], [0], [1], [0, 0, 1, 1], [], []>} : vector<1x16xf32>, vector<16x8xf32>, vector<1x8xf32> -> vector<1x8xf32>
    %c0_6 = arith.constant 0 : index
    %c0_7 = arith.constant 0 : index
    %6 = vector.load %arg3[%c0_6, %c0_7] : memref<1x8xf32, #tpu.memory_space<vmem>>, vector<1x8xf32>
    %7 = arith.addf %5, %6 : vector<1x8xf32>
    %cst_8 = arith.constant 5.000000e-01 : f32
    %8 = vector.broadcast %cst_8 : f32 to vector<1x8xf32>
    %9 = arith.mulf %8, %7 : vector<1x8xf32>
    %10 = math.tanh %9 : vector<1x8xf32>
    %cst_9 = arith.constant 1.000000e+00 : f32
    %11 = vector.broadcast %cst_9 : f32 to vector<1x8xf32>
    %12 = arith.addf %10, %11 : vector<1x8xf32>
    %cst_10 = arith.constant 5.000000e-01 : f32
    %13 = vector.broadcast %cst_10 : f32 to vector<1x8xf32>
    %14 = arith.mulf %13, %12 : vector<1x8xf32>
    %15 = arith.mulf %7, %14 : vector<1x8xf32>
    %c0_11 = arith.constant 0 : index
    %c0_12 = arith.constant 0 : index
    %16 = vector.load %arg4[%c0_11, %c0_12] : memref<8x16xf32, #tpu.memory_space<vmem>>, vector<8x16xf32>
    %cst_13 = arith.constant dense<0.000000e+00> : vector<1x16xf32>
    %17 = tpu.matmul %15, %16, %cst_13 {dimension_numbers = #tpu.dot_dimension_numbers<[1], [0], [0], [1], [0, 0, 1, 1], [], []>} : vector<1x8xf32>, vector<8x16xf32>, vector<1x16xf32> -> vector<1x16xf32>
    %c0_14 = arith.constant 0 : index
    %c0_15 = arith.constant 0 : index
    %18 = vector.load %arg5[%c0_14, %c0_15] : memref<1x16xf32, #tpu.memory_space<vmem>>, vector<1x16xf32>
    %19 = arith.addf %17, %18 : vector<1x16xf32>
    %cst_16 = arith.constant 5.000000e-01 : f32
    %20 = vector.broadcast %cst_16 : f32 to vector<1x16xf32>
    %21 = arith.mulf %20, %19 : vector<1x16xf32>
    %22 = math.tanh %21 : vector<1x16xf32>
    %cst_17 = arith.constant 1.000000e+00 : f32
    %23 = vector.broadcast %cst_17 : f32 to vector<1x16xf32>
    %24 = arith.addf %22, %23 : vector<1x16xf32>
    %cst_18 = arith.constant 5.000000e-01 : f32
    %25 = vector.broadcast %cst_18 : f32 to vector<1x16xf32>
    %26 = arith.mulf %25, %24 : vector<1x16xf32>
    %c0_19 = arith.constant 0 : index
    %c0_20 = arith.constant 0 : index
    %c0_21 = arith.constant 0 : index
    %27 = vector.load %arg1[%c0_19, %c0_20, %c0_21] : memref<1x16x128xf32, #tpu.memory_space<vmem>>, vector<1x16x128xf32>
    %28 = vector.shape_cast %26 : vector<1x16xf32> to vector<1x16x1xf32>
    %29 = vector.broadcast %28 : vector<1x16x1xf32> to vector<1x16x128xf32>
    %30 = arith.mulf %27, %29 : vector<1x16x128xf32>
    %c0_22 = arith.constant 0 : index
    %c0_23 = arith.constant 0 : index
    %c0_24 = arith.constant 0 : index
    %31 = vector.load %arg6[%c0_22, %c0_23, %c0_24] : memref<1x16x128xf32, #tpu.memory_space<vmem>>, vector<1x16x128xf32>
    tpu.vector_store %arg6[%c0_22, %c0_23, %c0_24], %30 {strides = array<i32>} : memref<1x16x128xf32, #tpu.memory_space<vmem>>, vector<1x16x128xf32>,
    return
  }
  func.func @transform_0(%arg0: i32) -> (i32, i32, i32) {
    %c0_i32 = arith.constant 0 : i32
    %c0_i32_0 = arith.constant 0 : i32
    %c0_i32_1 = arith.constant 0 : i32
    return %arg0, %c0_i32, %c0_i32_0 : i32, i32, i32
  }
  func.func @transform_1(%arg0: i32) -> (i32, i32) {
    %c0_i32 = arith.constant 0 : i32
    %c0_i32_0 = arith.constant 0 : i32
    %c0_i32_1 = arith.constant 0 : i32
    return %c0_i32, %c0_i32_0 : i32, i32
  }
  func.func @transform_2(%arg0: i32) -> (i32, i32) {
    %c0_i32 = arith.constant 0 : i32
    %c0_i32_0 = arith.constant 0 : i32
    %c0_i32_1 = arith.constant 0 : i32
    return %c0_i32, %c0_i32_0 : i32, i32
  }
  func.func @transform_3(%arg0: i32) -> (i32, i32) {
    %c0_i32 = arith.constant 0 : i32
    %c0_i32_0 = arith.constant 0 : i32
    %c0_i32_1 = arith.constant 0 : i32
    return %c0_i32, %c0_i32_0 : i32, i32
  }
  func.func @transform_4(%arg0: i32) -> (i32, i32) {
    %c0_i32 = arith.constant 0 : i32
    %c0_i32_0 = arith.constant 0 : i32
    %c0_i32_1 = arith.constant 0 : i32
    return %c0_i32, %c0_i32_0 : i32, i32
  }
  func.func @transform_5(%arg0: i32) -> (i32, i32, i32) {
    %c0_i32 = arith.constant 0 : i32
    %c0_i32_0 = arith.constant 0 : i32
    %c0_i32_1 = arith.constant 0 : i32
    return %arg0, %c0_i32, %c0_i32_0 : i32, i32, i32
  }
}

</mosaic_0001>

<bundles_post_ra>
// kernel: tpu_custom_call.1
= control target key start
LH: loop header
LB: loop body
LE: loop exit
PB: predicated region body
PF: predicated region fallthrough
CT: control target
= control target key end

     0   :  { %10 = vsyncpa [#allocation3], 0  ;;  %s946_s0 = inlined_call_operand.hbm [shape: f32[2,16,128], index: 0, kind: input, shape index: {}]   ;;  %s947_s1 = inlined_call_operand.vmem [shape: f32[16,8], index: 1, kind: input, shape index: {}]   ;;  %s948_s2 = inlined_call_operand.vmem [shape: f32[1,8], index: 2, kind: input, shape index: {}]   ;;  %s949_s3 = inlined_call_operand.vmem [shape: f32[8,16], index: 3, kind: input, shape index: {}]   ;;  %s950_s4 = inlined_call_operand.vmem [shape: f32[1,16], index: 4, kind: input, shape index: {}]   ;;  %s951_s5 = inlined_call_operand.hbm [shape: f32[2,16,128], index: 5, kind: output, shape index: {}]  }
   0x1   :  { %12 = vsyncpa [#allocation3 + $0x1], 0 }
   0x2   :  { %13 = vsyncpa [#allocation4], 0 }
   0x3   :  { %15 = vsyncpa [#allocation4 + $0x1], 0  ;;  %s761_s18 = smov 0   ;;  %s763_s19 = smov 0  }
   0x4   :  { %s765_s20 = smov 0   ;;  %s767_s21 = smov 0  }
   0x5 LB: > { %s782_s22 = sadd.s32 4294967295, %s720_s21   ;;  %s529_s23 = sadd.s32 4294967294, %s720_s21   ;;  %s720_s21 = sphi %s767_s21, %s964_s21   ;;  %s716_s20 = sphi %s765_s20, %s963_s20   ;;  %s712_s19 = sphi %s763_s19, %s962_s19   ;;  %s708_s18 = sphi %s761_s18, %s961_s18  }
   0x6   : > { %s786_s24 = sadd.s32 1, %s720_s21   ;;  %s28_s25 = sadd.s32 1, %s716_s20 }
   0x7   : > { %s25_s26 = ssub.s32 %s720_s21, %s786_s24  ;;  %p35_p0 = scmp.ne.s32.totalorder %s716_s20, %s712_s19 }
   0x8   : > { %p26_p1 = scmp.eq.s32.totalorder %s25_s26, 0  ;;  %p36_p2 = scmp.eq.s32.totalorder %s720_s21, 0 }
   0x9   : > { %p41_p3 = scmp.ne.s32.totalorder %s712_s19, %s708_s18  ;;  %p42_p4 = scmp.eq.s32.totalorder %s782_s22, 0 }
   0xa   : > { %s798_s27 = scalar_select %p26_p1, %s716_s20, %s28_s25  }
   0xb   : > { %p800_p5 = por %p36_p2, %p35_p0  ;;  %p804_p6 = por %p42_p4, %p41_p3 }
   0xc   : > { %p149_p7 = scmp.eq.s32.totalorder %s782_s22, 1  ;;  %p155_p8 = scmp.eq.s32.totalorder %s529_s23, 1 }
   0xd   : > { %p579_p10 = scmp.lt.s32.totalorder %s720_s21, 2  ;;  %s187_s7 = sand.u32 1, %s716_s20  }
   0xe   : > { %p811_p11 = por %p149_p7, %p35_p0  ;;  %p815_p12 = por %p155_p8, %p41_p3 }
   0xf   : > { %s545_s8 = sshll.u32 %s720_s21, 8  ;;  %s532_s9 = sshll.u32 %s187_s7, 4 }
  0x10   : > { %s955_s30 = scalar_select %p811_p11, 1, 0 }
  0x11   : > { %s956_s6 = scalar_select %p815_p12, 1, 0 }
  0x12   : > { %s824_s12 = scalar_lea.hbm %s946_s0, %s545_s8  ;;  %s191_s13 = scalar_lea.vmem [#allocation2], %s532_s9 }
  0x13   : > { %s198_s14 = sshll.u32 %s191_s13, 4  ;;  %p828_p13 = pnand %p579_p10, %p800_p5  ;;  %s832_s14 = int_to_ptr.vmem [resolvable:$true] %s198_s14 }
  0x14   : > { %s834_s16 = scalar_lea.sflag [#allocation3], %s187_s7  ;;  %s624_s17 = scalar_lea.hbm %s824_s12, 256 }
  0x15   : > { %p625_p0 = scmp.ne.s32.totalorder %s824_s12, %s624_s17  ;;  %p626_p1 = pneg %p828_p13 }
  0x16   : > { %s629_s26 = scalar_lea.hbm %s946_s0, 512  ;;  %p630_p4 = scmp.lt.u32.totalorder %s824_s12, %s946_s0 }
  0x17   : > { %p627_p2 = pnand %p626_p1, %p625_p0  ;;  %p631_p5 = scmp.lt.u32.totalorder %s629_s26, %s624_s17 }
  0x18   : > { %p633_p8 = scmp.lt.u32.totalorder %s624_s17, %s824_s12 }
  0x19   : > { %p628_p3 = pneg %p627_p2  ;;  %p632_p7 = por %p631_p5, %p630_p4 }
  0x1b   : > { %p634_p10 = por %p633_p8, %p632_p7 }
  0x1d   : > { %p635_p9 = pnand %p634_p10, %p628_p3 }
  0x1f   : > { %638 = shalt.err (!%p635_p9)
}
  0x20   : > { %s639_s7 = scalar_lea.vmem %s832_s14, 256  ;;  %s722_s9 = smov [#allocation2]  }
  0x21   : > { %p640_p0 = scmp.ne.s32.totalorder %s832_s14, %s639_s7  ;;  %s644_s10 = sshll.u32 %s722_s9, 4  ;;  %s645_s10 = int_to_ptr.vmem [resolvable:$false] %s644_s10 }
  0x22   : > { %s646_s11 = scalar_lea.vmem %s645_s10, 512  ;;  %p647_p11 = scmp.lt.s32.totalorder %s832_s14, %s645_s10 }
  0x23   : > { %p642_p2 = pnand %p640_p0, %p626_p1  ;;  %p648_p4 = scmp.lt.s32.totalorder %s646_s11, %s639_s7 }
  0x25   : > { %p643_p12 = pneg %p642_p2  ;;  %p649_p5 = por %p648_p4, %p647_p11 }
  0x27   : > { %p650_p7 = pnand %p649_p5, %p643_p12 }
  0x29   : > { %653 = shalt.err (!%p650_p7)
}
  0x2a   : > { %s723_s13 = smov 128   ;;  %s724_s17 = smov 8  }
  0x2b   : > { %574 = dma.hbm_to_vmem [thread:$0]  (!%p828_p13), %s824_s12, 256, %s832_s14, %s834_s16, %s723_s13, %s723_s13, %s724_s17  }
  0x2c   : > { %p535_p9 = scmp.ge.s32.totalorder %s720_s21, 1  ;;  %p206_p1 = scmp.lt.s32.totalorder %s720_s21, 3 }
  0x2e   : > { %p207_p3 = pnand %p535_p9, %p206_p1 }
  0x2f   : > { %s865_s23 = sand.u32 (!%p207_p3), 1, %s712_s19  }
  0x30   : > { %210 = sbr.rel (%p207_p3) target bundleno = 810 (0x32a), region = 40  ;;  %s536_s25 = sshll.u32 (!%p207_p3), %s865_s23, 4 }
  0x31   : > { %s213_s26 = scalar_lea.sflag (!%p207_p3), [#allocation3], %s865_s23  ;;  %s216_s28 = scalar_lea.vmem (!%p207_p3), [#allocation2], %s536_s25 }
  0x37   : > { %699 = dma.done.wait (%p804_p6), %s213_s26, 256  }
  0x38   : > { %701 = vsyncadd (%p804_p6), %s213_s26, 4294967040  ;;  %v243_v0 = vld [vmem:[%s216_s28] sm:$0xff]  ;;  %v875_v1 = vld [vmem:[%s216_s28 + $0x8] sm:$0xff]  ;;  %v725_v5 = vmov 0.0|0.0   ;;  %vm726_vm0 = vmmov 0   ;;  %v727_v6 = vmov 0.0   ;;  %v256_v7 = vlaneseq }
  0x39   : > { %245 = vadd.xlane.f32.xlu0 %v243_v0  ;;  %v251_v2 = vld [vmem:[%s947_s1] sm:$0xff]  ;;  %v252_v3 = vld [vmem:[%s947_s1 + $0x8] sm:$0xff]  ;;  %564 = vmatprep.subr.bf16.mxu0 %v725_v5  ;;  %vm267_vm1 = vcmask 130112   ;;  %vm269_vm2 = vcmask 130048   ;;  %vm349_vm3 = vcmask 64512   ;;  %s242_s13 = scalar_lea.vmem [#allocation5], %s536_s25 }
  0x3a   : > { %v565_v4 = vpack.c.bf16 %v252_v3, %v251_v2  ;;  %556 = vmatprep.mubr.msk.f32.mxu0 %vm726_vm0, %v727_v6  ;;  %559 = vmatprep.subr.mxu1 %v727_v6  ;;  %v257_v8 = vand.u32 127, %v256_v7  ;;  %v259_v9 = vshrl.u32 %v256_v7, 7  ;;  %v347_v20 = vld [vmem:[%s949_s3] sm:$0xff]  ;;  %s456_s17 = sshll.u32 %s242_s13, 4  ;;  %s546_s26 = sshll.u32 %s782_s22, 8  ;;  %s896_s17 = int_to_ptr.vmem [resolvable:$true] %s456_s17 }
  0x3b   : > { %561 = vmatprep.mubr.msk.f32.mxu1 %vm726_vm0, %v727_v6  ;;  %560 = vmatpush3.msra.mxu1 %v347_v20  ;;  %v253_v21 = vld [vmem:[%s948_s2] sm:$0x1]  ;;  %s901_s14 = scalar_lea.hbm %s951_s5, %s546_s26  ;;  %s443_s25 = scalar_lea.sflag [#allocation4], %s865_s23 }
  0x3c   : > { %566 = vmatpush3.bf16.msra.mxu0 %v565_v4  ;;  %v262_v10 = vadd.s32 4294967288, %v257_v8  ;;  %v260_v12 = vsub.s32 %v257_v8, %v259_v9  ;;  %v348_v30 = vld [vmem:[%s950_s4] sm:$0x1]  ;;  %v429_v37 = vsub.s32 0, %v259_v9  ;;  %s654_s15 = scalar_lea.vmem %s896_s17, 256  ;;  %p958_p11 = scmp.ne.s32.totalorder %s955_s30, 0 }
  0x3d   : > { %247 = vadd.xlane.f32.xlu0 %v875_v1  ;;  %p655_p6 = scmp.ne.s32.totalorder %s896_s17, %s654_s15  ;;  %s728_s22 = smov [#allocation5]  }
  0x3e   : > { %v265_v14 = vsub.s32 %v262_v10, %v259_v9  ;;  %s658_s16 = sshll.u32 %s728_s22, 4  ;;  %s659_s16 = int_to_ptr.vmem [resolvable:$false] %s658_s16 }
  0x3f   : > { %p656_p12 = pnand %p655_p6, %p958_p11  ;;  %s660_s29 = scalar_lea.vmem %s659_s16, 512 }
  0x40   : > { %p661_p8 = scmp.lt.s32.totalorder %s896_s17, %s659_s16  ;;  %p662_p10 = scmp.lt.s32.totalorder %s660_s29, %s654_s15 }
  0x41   : > { %p657_p13 = pneg %p656_p12 }
  0x42   : > { %p663_p0 = por %p662_p10, %p661_p8 }
  0x44   : > { %p664_p2 = pnand %p663_p0, %p657_p13 }
  0xc6   : > { %v246_v11 = vpop.xlane.xlu0 %245 }
  0xc7   : > { %v249_v13 = vmul.f32 0.0078125, %v246_v11 }
  0xc9   : > { %v261_v17 = vrot.slane %v249_v13, %v260_v12 }
  0xca   : > { %v248_v15 = vpop.xlane.xlu0 %247 }
  0xcb   : > { %v250_v16 = vmul.f32 0.0078125, %v248_v15 }
  0xcd   : > { %v266_v18 = vrot.slane %v250_v16, %v265_v14 }
  0xcf   : > { %v268_v19 = vsel %vm267_vm1, %v266_v18, %v261_v17 }
  0xd0   : > { %557 = vmatmul.mubr.msk.f32.vlgmr.msra.gmra.mrb[0].mxu0 %vm269_vm2, %v268_v19 }
 0x1a3   : > { %v338_v22 = vpop.f32.mrb[0].mxu0 }
 0x1a4   : > { %v339_v23 = vadd.f32 %v338_v22, %v253_v21  ;;  %v558_v24 = vpop.f32.mrb[1].mxu0 }
 0x1a6   : > { %v342_v25 = vmul.f32 0.5, %v339_v23 }
 0x1a8   : > { %620 = vtanh.f32 %v342_v25 }
 0x1b2   : > { %v621_v26 = vpop.eup %620 }
 0x1b3   : > { %v344_v27 = vadd.f32 1.0, %v621_v26 }
 0x1b5   : > { %v345_v28 = vmul.f32 0.5, %v344_v27 }
 0x1b7   : > { %v346_v29 = vmul.f32 %v345_v28, %v339_v23 }
 0x1b9   : > { %562 = vmatmul.mubr.msk.f32.vlgmr.msra.gmra.mrb[0].mxu1 %vm349_vm3, %v346_v29 }
 0x28c   : > { %v419_v31 = vpop.f32.mrb[0].mxu1 }
 0x28d   : > { %v420_v32 = vadd.f32 %v419_v31, %v348_v30  ;;  %v563_v33 = vpop.f32.mrb[1].mxu1 }
 0x28f   : > { %v423_v34 = vmul.f32 0.5, %v420_v32 }
 0x291   : > { %622 = vtanh.f32 %v423_v34 }
 0x29b   : > { %v623_v35 = vpop.eup %622 }
 0x29c   : > { %v425_v36 = vadd.f32 1.0, %v623_v35 }
 0x29e   : > { %v426_v38 = vmul.f32 0.5, %v425_v36 }
 0x2a0   : > { %v430_v39 = vrot.slane %v426_v38, %v429_v37 }
 0x2a2   : > { %432 = vbcast.lane.b32.xlu1 %v430_v39, 256 }
 0x2a6   : > { %436 = vbcast.lane.b32.xlu1 %v430_v39, 264 }
 0x314   : > { %v433_v40 = vpop.permute.xlu1 %432 }
 0x315   : > { %v438_v41 = vmul.f32 %v433_v40, %v243_v0 }
 0x317   : > { %440 = vst [vmem:[%s242_s13] sm:$0xff] %v438_v41 }
 0x318   : > { %v437_v42 = vpop.permute.xlu1 %436 }
 0x319   : > { %v439_v43 = vmul.f32 %v437_v42, %v875_v1 }
 0x31b   : > { %441 = vst [vmem:[%s242_s13 + $0x8] sm:$0xff] %v439_v43 }
 0x31c   : > { %667 = shalt.err (!%p664_p2)
}
 0x31d   : > { %s668_s8 = scalar_lea.hbm %s901_s14, 256  ;;  %s672_s10 = scalar_lea.hbm %s951_s5, 512 }
 0x31e   : > { %p669_p4 = scmp.ne.s32.totalorder %s901_s14, %s668_s8  ;;  %p673_p9 = scmp.lt.u32.totalorder %s901_s14, %s951_s5 }
 0x31f   : > { %p674_p1 = scmp.lt.u32.totalorder %s672_s10, %s668_s8  ;;  %p676_p6 = scmp.lt.u32.totalorder %s668_s8, %s901_s14 }
 0x320   : > { %p670_p5 = pnand %p669_p4, %p958_p11 }
 0x321   : > { %p675_p3 = por %p674_p1, %p673_p9 }
 0x322   : > { %p671_p7 = pneg %p670_p5 }
 0x323   : > { %p677_p12 = por %p676_p6, %p675_p3 }
 0x325   : > { %p678_p13 = pnand %p677_p12, %p671_p7 }
 0x327   : > { %681 = shalt.err (!%p678_p13)
}
 0x328   : > { %s729_s26 = smov 128   ;;  %s730_s28 = smov 8  }
 0x329   : > { %569 = dma.vmem_to_hbm [thread:$0]  (%p958_p11), %s896_s17, 256, %s901_s14, %s443_s25, %s729_s26, %s729_s26, %s730_s28  }
 0x32a PF: > { %s471_s12 = sand.u32 1, %s708_s18   ;;  %p959_p8 = scmp.ne.s32.totalorder %s956_s6, 0 }
 0x32b   : > { %p960_p10 = scmp.ge.s32.totalorder %s720_s21, 2  ;;  %s472_s15 = scalar_lea.sflag [#allocation4], %s471_s12 }
 0x32d   : > { %p576_p0 = pnand %p960_p10, %p959_p8 }
 0x32f   : > { %703 = dma.done.wait (!%p576_p0), %s472_s15, 256  }
 0x330   : > { %705 = vsyncadd (!%p576_p0), %s472_s15, 4294967040  ;;  %p18_p2 = scmp.ge.s32.totalorder %s786_s24, 4   ;;  %s961_s18 = smov %s712_s19 }
 0x331   : > { %s962_s19 = smov %s716_s20  ;;  %s963_s20 = smov %s798_s27 }
 0x332   : > { %s964_s21 = smov %s786_s24  ;;  %20 = sbr.rel (!%p18_p2) target bundleno = 5 (0x5), region = 85 }
 0x339   :  { %477 = vsyncpa [#allocation3], 1 }
 0x33a   :  { %479 = vsyncpa [#allocation3 + $0x1], 1 }
 0x33b   :  { %480 = vsyncpa [#allocation4], 1 }
 0x33c   :  { %482 = vsyncpa [#allocation4 + $0x1], 1 }

</bundles_post_ra>
